<compile_context>
chip_gen: v7x
topology: tpu7x:2x2x1
jax: 0.10.0
libtpu: 0.0.40
codegen_flags: <defaults>
</compile_context>

<pallas_src>
import math

import jax
import jax.numpy as jnp
from jax.experimental import pallas as pl
from jax.experimental.pallas import tpu as pltpu


H1, H2 = 400, 300  # real hidden sizes from the PyTorch module


def _round_up(n, m):
    return ((n + m - 1) // m) * m


def _bf16_vpu():
    """True on chips with a bf16 VPU/EUP (v6e, v7x); False on v5e and older."""
    kind = jax.devices()[0].device_kind.lower()
    return not any(tag in kind for tag in ("v2", "v3", "v4", "v5"))


def _make_actor_kernel(use_bf16_epilogue):
    ep_dtype = jnp.bfloat16 if use_bf16_epilogue else jnp.float32

    def actor_kernel(x_ref, w1_ref, b1_ref, w2_ref, b2_ref, w3_ref, b3_ref,
                     o_ref):
        # Layer 1: Linear(128pad -> 512pad) + ReLU.  bf16 MXU inputs, f32 acc.
        h1 = jnp.dot(x_ref[...].astype(jnp.bfloat16), w1_ref[...],
                     preferred_element_type=jnp.float32)
        h1 = jnp.maximum(h1.astype(ep_dtype) + b1_ref[...].astype(ep_dtype),
                         0.0)

        # Layer 2: Linear(512pad -> 384pad) + ReLU
        h2 = jnp.dot(h1.astype(jnp.bfloat16), w2_ref[...],
                     preferred_element_type=jnp.float32)
        h2 = jnp.maximum(h2.astype(ep_dtype) + b2_ref[...].astype(ep_dtype),
                         0.0)

        # Layer 3: Linear(384pad -> 128pad actions) + tanh.  tanh stays f32
        # (tiny: tile_b x 128, runs on the EUP); store in the output dtype
        # (bf16 on v6e/v7x halves the writeback, f32 on v5e).
        h3 = jnp.dot(h2.astype(jnp.bfloat16), w3_ref[...],
                     preferred_element_type=jnp.float32)
        o_ref[...] = jnp.tanh(h3 + b3_ref[...]).astype(o_ref.dtype)

    return actor_kernel


def actor_forward(x, params, action_dims, batch_tile_cap=1024):
    """x: [B, state_dims] float32. params: padded bf16 weights / f32 biases.

    Returns [B, action_dims] float32.
    """
    w1, b1, w2, b2, w3, b3 = (
        params["w1"], params["b1"], params["w2"],
        params["b2"], params["w3"], params["b3"],
    )
    B, S = x.shape
    Sp, H1p = w1.shape      # layer-1 contraction padded to 128 lanes
    H2p = w2.shape[1]
    Ap = w3.shape[1]

    use_bf16_ep = _bf16_vpu()
    out_dtype = jnp.bfloat16 if use_bf16_ep else jnp.float32
    out_isize = 2 if use_bf16_ep else 4

    # ---- batch tiling ------------------------------------------------------
    # Choose tile_b so b_pad hugs B (minimal wasted rows), capped so the
    # per-tile working set stays a few MB.  For mid/large batches force >= 2
    # tiles so the "parallel" axis actually shards across v7x's two
    # TensorCores; on 1-TC chips the extra grid step is ~0.35us noise.
    n_tiles = max(pl.cdiv(B, batch_tile_cap), 2 if B > 64 else 1)
    tile_b = _round_up(pl.cdiv(B, n_tiles), 8)
    b_pad = _round_up(B, tile_b)
    grid = (b_pad // tile_b,)

    # Zero-pad batch rows and the layer-1 contraction dim (state_dims -> Sp).
    # w1 rows past state_dims are zero, so the padding is numerically inert.
    if (b_pad, Sp) != (B, S):
        x = jnp.pad(x, ((0, b_pad - B), (0, Sp - S)))

    # Weight-DMA / writeback bound: tell XLA the real cost.
    cost = pl.CostEstimate(
        flops=2 * b_pad * (Sp * H1p + H1p * H2p + H2p * Ap),
        transcendentals=b_pad * Ap,                      # tanh
        bytes_accessed=(
            x.size * 4                                   # activations in (f32)
            + (w1.size + w2.size + w3.size) * 2          # bf16 weights
            + (b1.size + b2.size + b3.size) * 4          # f32 biases
            + b_pad * Ap * out_isize                     # output
        ),
    )

    out = pl.pallas_call(
        _make_actor_kernel(use_bf16_ep),
        out_shape=jax.ShapeDtypeStruct((b_pad, Ap), out_dtype),
        grid=grid,
        in_specs=[
            pl.BlockSpec((tile_b, Sp), lambda i: (i, 0)),  # x: per-tile
            pl.BlockSpec((Sp, H1p), lambda i: (0, 0)),     # weights/biases:
            pl.BlockSpec((1, H1p), lambda i: (0, 0)),      #   constant index_map
            pl.BlockSpec((H1p, H2p), lambda i: (0, 0)),    #   -> DMA'd once,
            pl.BlockSpec((1, H2p), lambda i: (0, 0)),      #   VMEM-resident
            pl.BlockSpec((H2p, Ap), lambda i: (0, 0)),
            pl.BlockSpec((1, Ap), lambda i: (0, 0)),
        ],
        out_specs=pl.BlockSpec((tile_b, Ap), lambda i: (i, 0)),
        compiler_params=pltpu.CompilerParams(
            dimension_semantics=("parallel",)),
        cost_estimate=cost,
    )(x, w1, b1, w2, b2, w3, b3)

    # Strip batch / action-lane padding and hand back f32.  Consumers that can
    # take the padded (b_pad, 128) block directly should do so and skip this
    # extra HBM pass.
    return out[:B, :action_dims].astype(jnp.float32)


def init_actor_params(key, state_dims, action_dims):
    """PyTorch-default-style init U(-1/sqrt(fan_in), +), padded to lane
    multiples.  Padded rows/cols/bias entries are exactly zero so the padding
    never leaks through relu/tanh.  Weights are stored in bfloat16."""
    s_pad = _round_up(state_dims, 128)    # layer-1 contraction -> 128
    h1_pad = _round_up(H1, 128)           # 512
    h2_pad = _round_up(H2, 128)           # 384
    a_pad = _round_up(action_dims, 128)   # 128

    def linear(k, fan_in, fan_out, in_pad, out_pad):
        kw, kb = jax.random.split(k)
        bound = 1.0 / math.sqrt(fan_in)
        w = jax.random.uniform(kw, (fan_in, fan_out), jnp.float32, -bound, bound)
        b = jax.random.uniform(kb, (1, fan_out), jnp.float32, -bound, bound)
        w = jnp.pad(w, ((0, in_pad - fan_in), (0, out_pad - fan_out)))
        b = jnp.pad(b, ((0, 0), (0, out_pad - fan_out)))
        return w.astype(jnp.bfloat16), b

    k1, k2, k3 = jax.random.split(key, 3)
    w1, b1 = linear(k1, state_dims, H1, s_pad, h1_pad)
    w2, b2 = linear(k2, H1, H2, h1_pad, h2_pad)
    w3, b3 = linear(k3, H2, action_dims, h2_pad, a_pad)
    return {"w1": w1, "b1": b1, "w2": w2, "b2": b2, "w3": w3, "b3": b3}


def actor_forward_ref(x, p, action_dims):
    """Matched-precision JAX reference (same bf16/f32 math as the kernel)."""
    ep = jnp.bfloat16 if _bf16_vpu() else jnp.float32
    Sp = p["w1"].shape[0]
    x = jnp.pad(x, ((0, 0), (0, Sp - x.shape[1])))
    h1 = jnp.dot(x.astype(jnp.bfloat16), p["w1"],
                 preferred_element_type=jnp.float32)
    h1 = jnp.maximum(h1.astype(ep) + p["b1"].astype(ep), 0.0)
    h2 = jnp.dot(h1.astype(jnp.bfloat16), p["w2"],
                 preferred_element_type=jnp.float32)
    h2 = jnp.maximum(h2.astype(ep) + p["b2"].astype(ep), 0.0)
    h3 = jnp.dot(h2.astype(jnp.bfloat16), p["w3"],
                 preferred_element_type=jnp.float32)
    out = jnp.tanh(h3 + p["b3"])
    if ep == jnp.bfloat16:
        out = out.astype(jnp.bfloat16)
    return out[:, :action_dims].astype(jnp.float32)


def actor_forward_ref_f32(x, p, action_dims):
    """Full-f32 reference (loose sanity check of bf16 quantization error)."""
    S = x.shape[1]
    w1 = p["w1"][:S].astype(jnp.float32)
    w2 = p["w2"].astype(jnp.float32)
    w3 = p["w3"].astype(jnp.float32)
    h1 = jax.nn.relu(x @ w1 + p["b1"])
    h2 = jax.nn.relu(h1 @ w2 + p["b2"])
    return jnp.tanh(h2 @ w3 + p["b3"])[:, :action_dims]


if __name__ == "__main__":
    key = jax.random.PRNGKey(0)
    k_params, k_state = jax.random.split(key)

    batch = 2
    state_dims = 16
    action_dims = 8

    params = init_actor_params(k_params, state_dims, action_dims)
    state = jax.random.normal(k_state, (batch, state_dims), dtype=jnp.float32)

    out = actor_forward(state, params, action_dims)
    out = jax.block_until_ready(out)
    assert out.shape == (batch, action_dims)
    assert out.dtype == jnp.float32

    # Matched-precision check (same bf16 weights / epilogue math as kernel).
    tol = 2e-2 if _bf16_vpu() else 2e-3
    ref = actor_forward_ref(state, params, action_dims)
    assert jnp.allclose(out, ref, atol=tol, rtol=tol)

    # Loose sanity check vs full-f32 math (bf16 quantization error only).
    ref_f32 = actor_forward_ref_f32(state, params, action_dims)
    assert jnp.allclose(out, ref_f32, atol=5e-2, rtol=5e-2)

    # Exercise the multi-tile path (minimal padding, >=2 tiles, non-multiple B).
    big = jax.random.normal(jax.random.PRNGKey(1), (300, state_dims),
                            dtype=jnp.float32)
    out_big = jax.block_until_ready(actor_forward(big, params, action_dims))
    assert out_big.shape == (300, action_dims)
    ref_big = actor_forward_ref(big, params, action_dims)
    assert jnp.allclose(out_big, ref_big, atol=tol, rtol=tol)

    print("KERNEL_OK")
</pallas_src>

<mosaic_0001>
module attributes {stable_mosaic.version = 11 : i64} {
  func.func @actor_kernel(%arg0: i32, %arg1: memref<8x128xf32, #tpu.memory_space<vmem>>, %arg2: memref<128x512xbf16, #tpu.memory_space<vmem>>, %arg3: memref<1x512xf32, #tpu.memory_space<vmem>>, %arg4: memref<512x384xbf16, #tpu.memory_space<vmem>>, %arg5: memref<1x384xf32, #tpu.memory_space<vmem>>, %arg6: memref<384x128xbf16, #tpu.memory_space<vmem>>, %arg7: memref<1x128xf32, #tpu.memory_space<vmem>>, %arg8: memref<8x128xbf16, #tpu.memory_space<vmem>>) attributes {dimension_semantics = [#tpu.dimension_semantics<parallel>], iteration_bounds = array<i64: 1>, scalar_prefetch = 0 : i64, scratch_operands = 0 : i64, tpu.core_type = #tpu.core_type<tc>, window_params = [{transform_indices = @transform_0, window_bounds = array<i64: 8, 128>}, {pipeline_mode = #tpu.pipeline_mode<synchronous>, transform_indices = @transform_1, window_bounds = array<i64: 128, 512>}, {pipeline_mode = #tpu.pipeline_mode<synchronous>, transform_indices = @transform_2, window_bounds = array<i64: 1, 512>}, {pipeline_mode = #tpu.pipeline_mode<synchronous>, transform_indices = @transform_3, window_bounds = array<i64: 512, 384>}, {pipeline_mode = #tpu.pipeline_mode<synchronous>, transform_indices = @transform_4, window_bounds = array<i64: 1, 384>}, {pipeline_mode = #tpu.pipeline_mode<synchronous>, transform_indices = @transform_5, window_bounds = array<i64: 384, 128>}, {pipeline_mode = #tpu.pipeline_mode<synchronous>, transform_indices = @transform_6, window_bounds = array<i64: 1, 128>}, {transform_indices = @transform_7, window_bounds = array<i64: 8, 128>}]} {
    %c0 = arith.constant 0 : index
    %c0_0 = arith.constant 0 : index
    %0 = vector.load %arg1[%c0, %c0_0] : memref<8x128xf32, #tpu.memory_space<vmem>>, vector<8x128xf32>
    %1 = arith.truncf %0 : vector<8x128xf32> to vector<8x128xbf16>
    %c0_1 = arith.constant 0 : index
    %c0_2 = arith.constant 0 : index
    %2 = vector.load %arg2[%c0_1, %c0_2] : memref<128x512xbf16, #tpu.memory_space<vmem>>, vector<128x512xbf16>
    %cst = arith.constant dense<0.000000e+00> : vector<8x512xf32>
    %3 = tpu.matmul %1, %2, %cst {dimension_numbers = #tpu.dot_dimension_numbers<[1], [0], [0], [1], [0, 0, 1, 1], [], []>} : vector<8x128xbf16>, vector<128x512xbf16>, vector<8x512xf32> -> vector<8x512xf32>
    %4 = arith.truncf %3 : vector<8x512xf32> to vector<8x512xbf16>
    %c0_3 = arith.constant 0 : index
    %c0_4 = arith.constant 0 : index
    %5 = vector.load %arg3[%c0_3, %c0_4] : memref<1x512xf32, #tpu.memory_space<vmem>>, vector<1x512xf32>
    %6 = arith.truncf %5 : vector<1x512xf32> to vector<1x512xbf16>
    %7 = vector.broadcast %6 : vector<1x512xbf16> to vector<8x512xbf16>
    %8 = arith.addf %4, %7 : vector<8x512xbf16>
    %cst_5 = arith.constant 0.000000e+00 : bf16
    %9 = vector.broadcast %cst_5 : bf16 to vector<8x512xbf16>
    %10 = arith.maximumf %8, %9 : vector<8x512xbf16>
    %c0_6 = arith.constant 0 : index
    %c0_7 = arith.constant 0 : index
    %11 = vector.load %arg4[%c0_6, %c0_7] : memref<512x384xbf16, #tpu.memory_space<vmem>>, vector<512x384xbf16>
    %cst_8 = arith.constant dense<0.000000e+00> : vector<8x384xf32>
    %12 = tpu.matmul %10, %11, %cst_8 {dimension_numbers = #tpu.dot_dimension_numbers<[1], [0], [0], [1], [0, 0, 1, 1], [], []>} : vector<8x512xbf16>, vector<512x384xbf16>, vector<8x384xf32> -> vector<8x384xf32>
    %13 = arith.truncf %12 : vector<8x384xf32> to vector<8x384xbf16>
    %c0_9 = arith.constant 0 : index
    %c0_10 = arith.constant 0 : index
    %14 = vector.load %arg5[%c0_9, %c0_10] : memref<1x384xf32, #tpu.memory_space<vmem>>, vector<1x384xf32>
    %15 = arith.truncf %14 : vector<1x384xf32> to vector<1x384xbf16>
    %16 = vector.broadcast %15 : vector<1x384xbf16> to vector<8x384xbf16>
    %17 = arith.addf %13, %16 : vector<8x384xbf16>
    %cst_11 = arith.constant 0.000000e+00 : bf16
    %18 = vector.broadcast %cst_11 : bf16 to vector<8x384xbf16>
    %19 = arith.maximumf %17, %18 : vector<8x384xbf16>
    %c0_12 = arith.constant 0 : index
    %c0_13 = arith.constant 0 : index
    %20 = vector.load %arg6[%c0_12, %c0_13] : memref<384x128xbf16, #tpu.memory_space<vmem>>, vector<384x128xbf16>
    %cst_14 = arith.constant dense<0.000000e+00> : vector<8x128xf32>
    %21 = tpu.matmul %19, %20, %cst_14 {dimension_numbers = #tpu.dot_dimension_numbers<[1], [0], [0], [1], [0, 0, 1, 1], [], []>} : vector<8x384xbf16>, vector<384x128xbf16>, vector<8x128xf32> -> vector<8x128xf32>
    %c0_15 = arith.constant 0 : index
    %c0_16 = arith.constant 0 : index
    %22 = vector.load %arg7[%c0_15, %c0_16] : memref<1x128xf32, #tpu.memory_space<vmem>>, vector<1x128xf32>
    %23 = vector.broadcast %22 : vector<1x128xf32> to vector<8x128xf32>
    %24 = arith.addf %21, %23 : vector<8x128xf32>
    %25 = math.tanh %24 : vector<8x128xf32>
    %26 = arith.truncf %25 : vector<8x128xf32> to vector<8x128xbf16>
    %c0_17 = arith.constant 0 : index
    %c0_18 = arith.constant 0 : index
    %27 = vector.load %arg8[%c0_17, %c0_18] : memref<8x128xbf16, #tpu.memory_space<vmem>>, vector<8x128xbf16>
    tpu.vector_store %arg8[%c0_17, %c0_18], %26 {strides = array<i32>} : memref<8x128xbf16, #tpu.memory_space<vmem>>, vector<8x128xbf16>,
    return
  }
  func.func @transform_0(%arg0: i32) -> (i32, i32) {
    %c0_i32 = arith.constant 0 : i32
    %c0_i32_0 = arith.constant 0 : i32
    return %arg0, %c0_i32 : i32, i32
  }
  func.func @transform_1(%arg0: i32) -> (i32, i32) {
    %c0_i32 = arith.constant 0 : i32
    %c0_i32_0 = arith.constant 0 : i32
    %c0_i32_1 = arith.constant 0 : i32
    return %c0_i32, %c0_i32_0 : i32, i32
  }
  func.func @transform_2(%arg0: i32) -> (i32, i32) {
    %c0_i32 = arith.constant 0 : i32
    %c0_i32_0 = arith.constant 0 : i32
    %c0_i32_1 = arith.constant 0 : i32
    return %c0_i32, %c0_i32_0 : i32, i32
  }
  func.func @transform_3(%arg0: i32) -> (i32, i32) {
    %c0_i32 = arith.constant 0 : i32
    %c0_i32_0 = arith.constant 0 : i32
    %c0_i32_1 = arith.constant 0 : i32
    return %c0_i32, %c0_i32_0 : i32, i32
  }
  func.func @transform_4(%arg0: i32) -> (i32, i32) {
    %c0_i32 = arith.constant 0 : i32
    %c0_i32_0 = arith.constant 0 : i32
    %c0_i32_1 = arith.constant 0 : i32
    return %c0_i32, %c0_i32_0 : i32, i32
  }
  func.func @transform_5(%arg0: i32) -> (i32, i32) {
    %c0_i32 = arith.constant 0 : i32
    %c0_i32_0 = arith.constant 0 : i32
    %c0_i32_1 = arith.constant 0 : i32
    return %c0_i32, %c0_i32_0 : i32, i32
  }
  func.func @transform_6(%arg0: i32) -> (i32, i32) {
    %c0_i32 = arith.constant 0 : i32
    %c0_i32_0 = arith.constant 0 : i32
    %c0_i32_1 = arith.constant 0 : i32
    return %c0_i32, %c0_i32_0 : i32, i32
  }
  func.func @transform_7(%arg0: i32) -> (i32, i32) {
    %c0_i32 = arith.constant 0 : i32
    %c0_i32_0 = arith.constant 0 : i32
    return %arg0, %c0_i32 : i32, i32
  }
}

</mosaic_0001>

<bundles_post_ra>
// kernel: tpu_custom_call.1
= control target key start
LH: loop header
LB: loop body
LE: loop exit
PB: predicated region body
PF: predicated region fallthrough
CT: control target
= control target key end

     0   :  { %12 = vsyncpa [#allocation3], 0  ;;  %s2326_s0 = inlined_call_operand.hbm [shape: f32[8,128], index: 0, kind: input, shape index: {}]   ;;  %s2327_s1 = inlined_call_operand.hbm [shape: bf16[128,512], index: 1, kind: input, shape index: {}]   ;;  %s2328_s2 = inlined_call_operand.vmem [shape: f32[1,512], index: 2, kind: input, shape index: {}]   ;;  %s2329_s3 = inlined_call_operand.hbm [shape: bf16[512,384], index: 3, kind: input, shape index: {}]   ;;  %s2330_s4 = inlined_call_operand.vmem [shape: f32[1,384], index: 4, kind: input, shape index: {}]   ;;  %s2331_s5 = inlined_call_operand.hbm [shape: bf16[384,128], index: 5, kind: input, shape index: {}]   ;;  %s2332_s6 = inlined_call_operand.vmem [shape: f32[1,128], index: 6, kind: input, shape index: {}]   ;;  %s2333_s7 = inlined_call_operand.hbm [shape: bf16[8,128], index: 7, kind: output, shape index: {}]  }
   0x1   :  { %13 = vsyncpa [#allocation6], 0 }
   0x2   :  { %14 = vsyncpa [#allocation9], 0 }
   0x3   :  { %15 = vsyncpa [#allocation4], 0  ;;  %s2160_s24 = smov [#allocation5]   ;;  %s2042_s28 = scalar_lea.hbm %s2327_s1, 4096 }
   0x4   :  { %s31_s25 = sshll.u32 %s2160_s24, 4  ;;  %p2043_p0 = scmp.ne.s32.totalorder %s2327_s1, %s2042_s28  ;;  %s32_s25 = int_to_ptr.vmem [resolvable:$true] %s31_s25 }
   0x5   :  { %p2046_p1 = scmp.lt.u32.totalorder %s2042_s28, %s2327_s1 }
   0x7   :  { %p2048_p2 = pnand %p2046_p1, %p2043_p0 }
   0x9   :  { %2051 = shalt.err (!%p2048_p2)
}
   0xa   :  { %s2052_s10 = scalar_lea.vmem %s32_s25, 4096  ;;  %p2057_p4 = scmp.lt.s32.totalorder %s32_s25, %s32_s25 }
   0xb   :  { %p2053_p3 = scmp.ne.s32.totalorder %s32_s25, %s2052_s10  ;;  %p2058_p5 = scmp.lt.s32.totalorder %s2052_s10, %s2052_s10 }
   0xd   :  { %p2059_p6 = por %p2058_p5, %p2057_p4 }
   0xf   :  { %p2060_p7 = pnand %p2059_p6, %p2053_p3 }
  0x11   :  { %2063 = shalt.err (!%p2060_p7)
}
  0x12   :  { %s2161_s11 = smov 256   ;;  %s2162_s12 = smov 16  }
  0x13   :  { %37 = dma.hbm_to_vmem [thread:$0]  %s2327_s1, 4096, %s32_s25, [#allocation6], %s2161_s11, %s2161_s11, %s2162_s12  }
  0x14   :  { %s2163_s15 = smov [#allocation2]   ;;  %s2164_s17 = smov [#allocation7]  }
  0x15   :  { %s22_s16 = sshll.u32 %s2163_s15, 4  ;;  %s45_s18 = sshll.u32 %s2164_s17, 4  ;;  %s23_s16 = int_to_ptr.vmem [resolvable:$true] %s22_s16  ;;  %s46_s18 = int_to_ptr.vmem [resolvable:$true] %s45_s18 }
  0x16   :  { %s2064_s21 = scalar_lea.hbm %s2326_s0, 128 }
  0x17   :  { %p2065_p8 = scmp.ne.s32.totalorder %s2326_s0, %s2064_s21  ;;  %p2068_p9 = scmp.lt.u32.totalorder %s2064_s21, %s2326_s0 }
  0x19   :  { %p2070_p10 = pnand %p2068_p9, %p2065_p8 }
  0x1b   :  { %2073 = shalt.err (!%p2070_p10)
}
  0x1c   :  { %s2074_s1 = scalar_lea.vmem %s23_s16, 128  ;;  %p2079_p12 = scmp.lt.s32.totalorder %s23_s16, %s23_s16 }
  0x1d   :  { %p2075_p11 = scmp.ne.s32.totalorder %s23_s16, %s2074_s1  ;;  %p2080_p13 = scmp.lt.s32.totalorder %s2074_s1, %s2074_s1 }
  0x1f   :  { %p2081_p0 = por %p2080_p13, %p2079_p12 }
  0x21   :  { %p2082_p1 = pnand %p2081_p0, %p2075_p11 }
  0x23   :  { %2085 = shalt.err (!%p2082_p1)
}
  0x24   :  { %25 = dma.hbm_to_vmem [thread:$0]  %s2326_s0, 128, %s23_s16, [#allocation3]  }
  0x25   :  { %s2086_s30 = scalar_lea.hbm %s2329_s3, 12288 }
  0x26   :  { %p2087_p2 = scmp.ne.s32.totalorder %s2329_s3, %s2086_s30  ;;  %p2090_p3 = scmp.lt.u32.totalorder %s2086_s30, %s2329_s3 }
  0x28   :  { %p2092_p4 = pnand %p2090_p3, %p2087_p2 }
  0x2a   :  { %2095 = shalt.err (!%p2092_p4)
}
  0x2b   :  { %s2096_s12 = scalar_lea.vmem %s46_s18, 12288  ;;  %p2101_p6 = scmp.lt.s32.totalorder %s46_s18, %s46_s18 }
  0x2c   :  { %p2097_p5 = scmp.ne.s32.totalorder %s46_s18, %s2096_s12  ;;  %p2102_p7 = scmp.lt.s32.totalorder %s2096_s12, %s2096_s12 }
  0x2e   :  { %p2103_p8 = por %p2102_p7, %p2101_p6 }
  0x30   :  { %p2104_p9 = pnand %p2103_p8, %p2097_p5 }
  0x32   :  { %2107 = shalt.err (!%p2104_p9)
}
  0x33   :  { %s2165_s0 = smov 192   ;;  %s2166_s13 = smov 12  }
  0x34   :  { %51 = dma.hbm_to_vmem [thread:$0]  %s2329_s3, 12288, %s46_s18, [#allocation6], %s2165_s0, %s2165_s0, %s2166_s13  }
  0x35   :  { %s2167_s16 = smov [#allocation8]   ;;  %s2108_s21 = scalar_lea.hbm %s2331_s5, 3072 }
  0x36   :  { %s59_s17 = sshll.u32 %s2167_s16, 4  ;;  %p2109_p10 = scmp.ne.s32.totalorder %s2331_s5, %s2108_s21  ;;  %s60_s17 = int_to_ptr.vmem [resolvable:$true] %s59_s17 }
  0x37   :  { %p2112_p11 = scmp.lt.u32.totalorder %s2108_s21, %s2331_s5 }
  0x39   :  { %p2114_p12 = pnand %p2112_p11, %p2109_p10 }
  0x3b   :  { %2117 = shalt.err (!%p2114_p12)
}
  0x3c   :  { %s2118_s1 = scalar_lea.vmem %s60_s17, 3072  ;;  %p2123_p0 = scmp.lt.s32.totalorder %s60_s17, %s60_s17 }
  0x3d   :  { %p2119_p13 = scmp.ne.s32.totalorder %s60_s17, %s2118_s1  ;;  %p2124_p1 = scmp.lt.s32.totalorder %s2118_s1, %s2118_s1 }
  0x3f   :  { %p2125_p2 = por %p2124_p1, %p2123_p0 }
  0x41   :  { %p2126_p3 = pnand %p2125_p2, %p2119_p13 }
  0x43   :  { %2129 = shalt.err (!%p2126_p3)
}
  0x44   :  { %s2168_s3 = smov 64   ;;  %s2169_s18 = smov 4  }
  0x45   :  { %65 = dma.hbm_to_vmem [thread:$0]  %s2331_s5, 3072, %s60_s17, [#allocation9], %s2168_s3, %s2168_s3, %s2169_s18  }
  0x46   :  { %2152 = dma.done.wait [#allocation3], 128  }
  0x47   :  { %2153 = vsyncadd [#allocation3], 4294967168 }
  0x48   :  { %2154 = dma.done.wait [#allocation6], 16384  }
  0x49   :  { %2155 = vsyncadd [#allocation6], 4294950912 }
  0x4a   :  { %2156 = dma.done.wait [#allocation9], 3072  }
  0x4b   :  { %2157 = vsyncadd [#allocation9], 4294964224  ;;  %v2170_v0 = vmov 0   ;;  %v1840_v1 = vld [vmem:[#allocation5 + $0x4] ss:$16 sps:$4 sm:$0xff]   ;;  %v81_v26 = vld [vmem:[#allocation2] sm:$0xff] }
  0x4c   :  { %307 = vmatprep.mubr.bf16.mxu0 %v2170_v0  ;;  %348 = vmatprep.mubr.bf16.mxu1 %v2170_v0  ;;  %v1842_v2 = vld [vmem:[#allocation5] ss:$16 sps:$4 sm:$0xff]   ;;  %v1843_v3 = vld [vmem:[#allocation5 + $0x24] ss:$16 sps:$4 sm:$0xff]   ;;  %v1864_v10 = vld [vmem:[#allocation5 + $0xc] ss:$16 sps:$4 sm:$0xff]   ;;  %v82_v30 = vpack.c.bf16 %v81_v26, %v81_v26 }
  0x4d   :  { %275 = vmatprep.subr.bf16.mxu0 %v1840_v1  ;;  %v1845_v4 = vld [vmem:[#allocation5 + $0x20] ss:$16 sps:$4 sm:$0xff]   ;;  %v1846_v5 = vld [vmem:[#allocation5 + $0x44] ss:$16 sps:$4 sm:$0xff]   ;;  %v1866_v11 = vld [vmem:[#allocation5 + $0x8] ss:$16 sps:$4 sm:$0xff]   ;;  %316 = vmatprep.subr.bf16.mxu1 %v1864_v10 }
  0x4e   :  { %276 = vmatpush1.bf16.msra.mxu0 %v1842_v2  ;;  %v1848_v6 = vld [vmem:[#allocation5 + $0x40] ss:$16 sps:$4 sm:$0xff]   ;;  %v1849_v7 = vld [vmem:[#allocation5 + $0x64] ss:$16 sps:$4 sm:$0xff]   ;;  %v1867_v12 = vld [vmem:[#allocation5 + $0x2c] ss:$16 sps:$4 sm:$0xff]   ;;  %317 = vmatpush1.bf16.msra.mxu1 %v1866_v11 }
  0x4f   :  { %277 = vmatprep.subr.bf16.mxu0 %v1843_v3  ;;  %v1851_v8 = vld [vmem:[#allocation5 + $0x60] ss:$16 sps:$4 sm:$0xff]   ;;  %v1852_v9 = vld [vmem:[#allocation5 + $0x84] ss:$16 sps:$4 sm:$0xff]   ;;  %v1869_v14 = vld [vmem:[#allocation5 + $0x28] ss:$16 sps:$4 sm:$0xff]   ;;  %318 = vmatprep.subr.bf16.mxu1 %v1867_v12 }
  0x50   :  { %v1854_v13 = vld [vmem:[#allocation5 + $0x80] ss:$16 sps:$4 sm:$0xff]   ;;  %v1870_v15 = vld [vmem:[#allocation5 + $0x4c] ss:$16 sps:$4 sm:$0xff]   ;;  %v1855_v16 = vld [vmem:[#allocation5 + $0xa4] ss:$16 sps:$4 sm:$0xff]  }
  0x51   :  { %v1857_v17 = vld [vmem:[#allocation5 + $0xa0] ss:$16 sps:$4 sm:$0xff]   ;;  %v1872_v18 = vld [vmem:[#allocation5 + $0x48] ss:$16 sps:$4 sm:$0xff]   ;;  %v1873_v19 = vld [vmem:[#allocation5 + $0x6c] ss:$16 sps:$4 sm:$0xff]  }
  0x52   :  { %278 = vmatpush1.bf16.msra.mxu0 %v1845_v4  ;;  %319 = vmatpush1.bf16.msra.mxu1 %v1869_v14  ;;  %v1858_v20 = vld [vmem:[#allocation5 + $0xc4] ss:$16 sps:$4 sm:$0xff]   ;;  %v1860_v21 = vld [vmem:[#allocation5 + $0xc0] ss:$16 sps:$4 sm:$0xff]   ;;  %v1875_v22 = vld [vmem:[#allocation5 + $0x68] ss:$16 sps:$4 sm:$0xff]  }
  0x53   :  { %279 = vmatprep.subr.bf16.mxu0 %v1846_v5  ;;  %320 = vmatprep.subr.bf16.mxu1 %v1870_v15  ;;  %v1876_v23 = vld [vmem:[#allocation5 + $0x8c] ss:$16 sps:$4 sm:$0xff]   ;;  %v1861_v24 = vld [vmem:[#allocation5 + $0xe4] ss:$16 sps:$4 sm:$0xff]   ;;  %v1863_v25 = vld [vmem:[#allocation5 + $0xe0] ss:$16 sps:$4 sm:$0xff]  }
  0x54   :  { %v1878_v27 = vld [vmem:[#allocation5 + $0x88] ss:$16 sps:$4 sm:$0xff]   ;;  %v1879_v28 = vld [vmem:[#allocation5 + $0xac] ss:$16 sps:$4 sm:$0xff]   ;;  %v1890_v29 = vld [vmem:[#allocation7 + $0x4] ss:$12 sps:$4 sm:$0xff]  }
  0x55   :  { %v1881_v31 = vld [vmem:[#allocation5 + $0xa8] ss:$16 sps:$4 sm:$0xff]   ;;  %v1882_v32 = vld [vmem:[#allocation5 + $0xcc] ss:$16 sps:$4 sm:$0xff]   ;;  %v1896_v38 = vld [vmem:[#allocation7 + $0x34] ss:$12 sps:$4 sm:$0xff]  }
  0x56   :  { %280 = vmatpush1.bf16.msra.mxu0 %v1848_v6  ;;  %321 = vmatpush1.bf16.msra.mxu1 %v1872_v18  ;;  %v1888_v33 = vld [vmem:[#allocation7] ss:$12 sps:$4 sm:$0xff]   ;;  %v1893_v34 = vld [vmem:[#allocation7 + $0x1c] ss:$12 sps:$4 sm:$0xff]   ;;  %v1891_v37 = vld [vmem:[#allocation7 + $0x18] ss:$12 sps:$4 sm:$0xff]  }
  0x57   :  { %281 = vmatprep.subr.bf16.mxu0 %v1849_v7  ;;  %322 = vmatprep.subr.bf16.mxu1 %v1873_v19  ;;  %v1884_v35 = vld [vmem:[#allocation5 + $0xc8] ss:$16 sps:$4 sm:$0xff]   ;;  %v1885_v36 = vld [vmem:[#allocation5 + $0xec] ss:$16 sps:$4 sm:$0xff]   ;;  %v1902_v46 = vld [vmem:[#allocation7 + $0x64] ss:$12 sps:$4 sm:$0xff]  }
  0x58   :  { %v1887_v39 = vld [vmem:[#allocation5 + $0xe8] ss:$16 sps:$4 sm:$0xff]   ;;  %v1894_v40 = vld [vmem:[#allocation7 + $0x30] ss:$12 sps:$4 sm:$0xff]   ;;  %v1920_v45 = vld [vmem:[#allocation7 + $0xe0] ss:$12 sps:$4 sm:$0xff]  }
  0x59   :  { %v1915_v41 = vld [vmem:[#allocation7 + $0xc8] ss:$12 sps:$4 sm:$0xff]   ;;  %v1899_v42 = vld [vmem:[#allocation7 + $0x4c] ss:$12 sps:$4 sm:$0xff]   ;;  %v1930_v54 = vld [vmem:[#allocation7 + $0x110] ss:$12 sps:$4 sm:$0xff]  }
  0x5a   :  { %282 = vmatpush1.bf16.msra.mxu0 %v1851_v8  ;;  %323 = vmatpush1.bf16.msra.mxu1 %v1875_v22  ;;  %v1916_v43 = vld [vmem:[#allocation7 + $0x8] ss:$12 sps:$4 sm:$0xff]   ;;  %v1900_v47 = vld [vmem:[#allocation7 + $0x60] ss:$12 sps:$4 sm:$0xff]   ;;  %v1925_v49 = vld [vmem:[#allocation7 + $0xf8] ss:$12 sps:$4 sm:$0xff]   ;;  %v363_v22 = vlaneseq }
  0x5b   :  { %283 = vmatprep.subr.bf16.mxu0 %v1852_v9  ;;  %324 = vmatprep.subr.bf16.mxu1 %v1876_v23  ;;  %v1897_v44 = vld [vmem:[#allocation7 + $0x48] ss:$12 sps:$4 sm:$0xff]   ;;  %v1921_v48 = vld [vmem:[#allocation7 + $0x20] ss:$12 sps:$4 sm:$0xff]   ;;  %v1903_v51 = vld [vmem:[#allocation7 + $0x78] ss:$12 sps:$4 sm:$0xff]  }
  0x5c   :  { %v1905_v50 = vld [vmem:[#allocation7 + $0x7c] ss:$12 sps:$4 sm:$0xff]   ;;  %v1908_v52 = vld [vmem:[#allocation7 + $0x94] ss:$12 sps:$4 sm:$0xff]   ;;  %v1926_v53 = vld [vmem:[#allocation7 + $0x38] ss:$12 sps:$4 sm:$0xff]  }
  0x5d   :  { %v1931_v55 = vld [vmem:[#allocation7 + $0x50] ss:$12 sps:$4 sm:$0xff]   ;;  %v1935_v57 = vld [vmem:[#allocation7 + $0x128] ss:$12 sps:$4 sm:$0xff]   ;;  %v1911_v58 = vld [vmem:[#allocation7 + $0xac] ss:$12 sps:$4 sm:$0xff]  }
  0x5e   :  { %284 = vmatpush1.bf16.msra.mxu0 %v1854_v13  ;;  %325 = vmatpush1.bf16.msra.mxu1 %v1878_v27  ;;  %v1906_v56 = vld [vmem:[#allocation7 + $0x90] ss:$12 sps:$4 sm:$0xff]   ;;  %v1936_v59 = vld [vmem:[#allocation7 + $0x68] ss:$12 sps:$4 sm:$0xff]   ;;  %v1940_v61 = vld [vmem:[#allocation7 + $0x140] ss:$12 sps:$4 sm:$0xff]  }
  0x5f   :  { %285 = vmatprep.subr.bf16.mxu0 %v1855_v16  ;;  %326 = vmatprep.subr.bf16.mxu1 %v1879_v28  ;;  %v1909_v60 = vld [vmem:[#allocation7 + $0xa8] ss:$12 sps:$4 sm:$0xff]   ;;  %v1914_v62 = vld [vmem:[#allocation7 + $0xc4] ss:$12 sps:$4 sm:$0xff]   ;;  %v1941_v63 = vld [vmem:[#allocation7 + $0x80] ss:$12 sps:$4 sm:$0xff]  }
  0x60   :  { %v1912_v1 = vld [vmem:[#allocation7 + $0xc0] ss:$12 sps:$4 sm:$0xff]   ;;  %v1919_v2 = vld [vmem:[#allocation7 + $0xdc] ss:$12 sps:$4 sm:$0xff]   ;;  %v1917_v3 = vld [vmem:[#allocation7 + $0xd8] ss:$12 sps:$4 sm:$0xff]  }
  0x61   :  { %v1924_v4 = vld [vmem:[#allocation7 + $0xf4] ss:$12 sps:$4 sm:$0xff]   ;;  %v1922_v5 = vld [vmem:[#allocation7 + $0xf0] ss:$12 sps:$4 sm:$0xff]   ;;  %v1929_v6 = vld [vmem:[#allocation7 + $0x10c] ss:$12 sps:$4 sm:$0xff]  }
  0x62   :  { %286 = vmatpush1.bf16.msra.mxu0 %v1857_v17  ;;  %327 = vmatpush1.bf16.msra.mxu1 %v1881_v31  ;;  %v1927_v7 = vld [vmem:[#allocation7 + $0x108] ss:$12 sps:$4 sm:$0xff]   ;;  %v1934_v8 = vld [vmem:[#allocation7 + $0x124] ss:$12 sps:$4 sm:$0xff]   ;;  %v1932_v9 = vld [vmem:[#allocation7 + $0x120] ss:$12 sps:$4 sm:$0xff]  }
  0x63   :  { %287 = vmatprep.subr.bf16.mxu0 %v1858_v20  ;;  %328 = vmatprep.subr.bf16.mxu1 %v1882_v32  ;;  %v1939_v10 = vld [vmem:[#allocation7 + $0x13c] ss:$12 sps:$4 sm:$0xff]   ;;  %v1937_v11 = vld [vmem:[#allocation7 + $0x138] ss:$12 sps:$4 sm:$0xff]   ;;  %v1944_v12 = vld [vmem:[#allocation7 + $0x154] ss:$12 sps:$4 sm:$0xff]  }
  0x64   :  { %v1945_v13 = vld [vmem:[#allocation7 + $0x158] ss:$12 sps:$4 sm:$0xff]   ;;  %v1942_v14 = vld [vmem:[#allocation7 + $0x150] ss:$12 sps:$4 sm:$0xff]   ;;  %v1947_v18 = vld [vmem:[#allocation7 + $0x168] ss:$12 sps:$4 sm:$0xff]  }
  0x65   :  { %v1946_v15 = vld [vmem:[#allocation7 + $0x98] ss:$12 sps:$4 sm:$0xff]   ;;  %v1950_v17 = vld [vmem:[#allocation7 + $0x170] ss:$12 sps:$4 sm:$0xff]   ;;  %v2264_v23 = vshrl.u32 %v363_v22, 7  ;;  %vm2172_vm0 = vmmov 0  }
  0x66   :  { %288 = vmatpush1.bf16.msra.mxu0 %v1860_v21  ;;  %329 = vmatpush1.bf16.msra.mxu1 %v1884_v35  ;;  %v1949_v16 = vld [vmem:[#allocation7 + $0x16c] ss:$12 sps:$4 sm:$0xff]   ;;  %v1951_v19 = vld [vmem:[#allocation7 + $0xb0] ss:$12 sps:$4 sm:$0xff]   ;;  %v1955_v21 = vld [vmem:[#allocation7 + $0x248] ss:$12 sps:$4 sm:$0xff]  }
  0x67   :  { %289 = vmatprep.subr.bf16.mxu0 %v1861_v24  ;;  %330 = vmatprep.subr.bf16.mxu1 %v1885_v36  ;;  %v1954_v20 = vld [vmem:[#allocation7 + $0x184] ss:$12 sps:$4 sm:$0xff]   ;;  %v2267_v24 = vsub.s32 0, %v2264_v23  ;;  %v369_v26 = vsub.s32 1, %v2264_v23  ;;  %v377_v32 = vsub.s32 3, %v2264_v23  ;;  %s2173_s8 = smov [#allocation10]  }
  0x68   :  { %s1563_s9 = sshll.u32 %s2173_s8, 4  ;;  %s1564_s9 = int_to_ptr.vmem [resolvable:$true] %s1563_s9 }
  0x69   :  { %s2130_s10 = scalar_lea.vmem %s1564_s9, 64  ;;  %p2135_p5 = scmp.lt.s32.totalorder %s1564_s9, %s1564_s9 }
  0x6a   :  { %290 = vmatpush1.bf16.msra.mxu0 %v1863_v25  ;;  %331 = vmatpush1.bf16.msra.mxu1 %v1887_v39  ;;  %v361_v25 = vld [vmem:[%s2328_s2] sm:$0xf]  ;;  %p2131_p4 = scmp.ne.s32.totalorder %s1564_s9, %s2130_s10  ;;  %p2136_p6 = scmp.lt.s32.totalorder %s2130_s10, %s2130_s10 }
  0x6b   :  { %1063 = vmatprep.subr.bf16.mxu0 %v1890_v29  ;;  %1727 = vmatprep.subr.bf16.mxu1 %v1915_v41  ;;  %v366_v27 = vrot.slane %v361_v25, %v2267_v24  ;;  %v370_v28 = vrot.slane %v361_v25, %v369_v26  ;;  %v378_v35 = vrot.slane %v361_v25, %v377_v32  ;;  %v1987_v32 = vld [vmem:[#allocation7 + $0x228] ss:$12 sps:$4 sm:$0xff]  }
  0x6c   :  { %p2137_p7 = por %p2136_p6, %p2135_p5 }
  0x6d   :  { %308 = vmatmul.mubr.bf16.vlgmr.msra.gmra.mrb[0].mxu0 %v82_v30  ;;  %349 = vmatmul.mubr.bf16.vlgmr.msra.gmra.mrb[0].mxu1 %v82_v30  ;;  %v383_v29 = vpack.c.bf16 %v366_v27, %v366_v27  ;;  %v384_v30 = vpack.c.bf16 %v370_v28, %v370_v28  ;;  %v1982_v27 = vld [vmem:[#allocation7 + $0x210] ss:$12 sps:$4 sm:$0xff]   ;;  %v1986_v28 = vld [vmem:[#allocation7 + $0x218] ss:$12 sps:$4 sm:$0xff]  }
  0x6e   :  { %1064 = vmatpush1.bf16.msra.mxu0 %v1888_v33  ;;  %1728 = vmatpush3.bf16.msra.mxu1 %v1916_v43  ;;  %p2138_p8 = pnand %p2137_p7, %p2131_p4 }
  0x6f   :  { %1065 = vmatprep.subr.bf16.mxu0 %v1893_v34  ;;  %1729 = vmatprep.subr.bf16.mxu1 %v1920_v45  ;;  %v388_v31 = vpack.i.b16 %v383_v29, %v383_v29  ;;  %v395_v33 = vpack.i.b16 %v384_v30, %v384_v30  ;;  %v1989_v29 = vld [vmem:[#allocation7 + $0x22c] ss:$12 sps:$4 sm:$0xff]   ;;  %v1990_v30 = vld [vmem:[#allocation7 + $0x2f0] ss:$12 sps:$4 sm:$0xff]  }
  0x71   :  { %v393_v34 = vrot.slane %v388_v31, %v2267_v24 }
  0x72   :  { %1066 = vmatpush1.bf16.msra.mxu0 %v1891_v37  ;;  %1730 = vmatpush3.bf16.msra.mxu1 %v1921_v48  ;;  %v400_v37 = vrot.slane %v395_v33, %v2267_v24  ;;  %v1956_v48 = vld [vmem:[#allocation7 + $0x188] ss:$12 sps:$4 sm:$0xff]   ;;  %v1991_v33 = vld [vmem:[#allocation7 + $0x230] ss:$12 sps:$4 sm:$0xff]  }
  0x73   :  { %1067 = vmatprep.subr.bf16.mxu0 %v1896_v38  ;;  %1731 = vmatprep.subr.bf16.mxu1 %v1925_v49 }
  0x76   :  { %1068 = vmatpush1.bf16.msra.mxu0 %v1894_v40  ;;  %1732 = vmatpush3.bf16.msra.mxu1 %v1926_v53  ;;  %v1957_v53 = vld [vmem:[#allocation7 + $0x198] ss:$12 sps:$4 sm:$0xff]  }
  0x77   :  { %1069 = vmatprep.subr.bf16.mxu0 %v1899_v42  ;;  %1733 = vmatprep.subr.bf16.mxu1 %v1930_v54  ;;  %v1961_v54 = vld [vmem:[#allocation7 + $0x1a0] ss:$12 sps:$4 sm:$0xff]  }
  0x7a   :  { %1070 = vmatpush1.bf16.msra.mxu0 %v1897_v44  ;;  %1734 = vmatpush3.bf16.msra.mxu1 %v1931_v55  ;;  %v386_v44 = vpack.c.bf16 %v378_v35, %v378_v35  ;;  %v1964_v55 = vld [vmem:[#allocation7 + $0x1b4] ss:$12 sps:$4 sm:$0xff]  }
  0x7b   :  { %1071 = vmatprep.subr.bf16.mxu0 %v1902_v46  ;;  %1735 = vmatprep.subr.bf16.mxu1 %v1935_v57 }
  0x7e   :  { %1072 = vmatpush1.bf16.msra.mxu0 %v1900_v47  ;;  %1736 = vmatpush3.bf16.msra.mxu1 %v1936_v59  ;;  %v1952_v47 = vld [vmem:[#allocation7 + $0x180] ss:$12 sps:$4 sm:$0xff]  }
  0x7f   :  { %1073 = vmatprep.subr.bf16.mxu0 %v1905_v50  ;;  %1737 = vmatprep.subr.bf16.mxu1 %v1940_v61  ;;  %v1959_v50 = vld [vmem:[#allocation7 + $0x19c] ss:$12 sps:$4 sm:$0xff]  }
  0x82   :  { %1074 = vmatpush1.bf16.msra.mxu0 %v1903_v51  ;;  %1738 = vmatpush3.bf16.msra.mxu1 %v1941_v63  ;;  %v1960_v51 = vld [vmem:[#allocation7 + $0x260] ss:$12 sps:$4 sm:$0xff]   ;;  %v1962_v63 = vld [vmem:[#allocation7 + $0x1b0] ss:$12 sps:$4 sm:$0xff]  }
  0x83   :  { %1075 = vmatprep.subr.bf16.mxu0 %v1908_v52  ;;  %1739 = vmatprep.subr.bf16.mxu1 %v1945_v13  ;;  %v409_v52 = vpack.i.b16 %v386_v44, %v386_v44  ;;  %v1972_v13 = vld [vmem:[#allocation7 + $0x1e0] ss:$12 sps:$4 sm:$0xff]  }
  0x84   :  { %v2004_v44 = vld [vmem:[#allocation7 + $0x2a0] ss:$12 sps:$4 sm:$0xff]  }
  0x86   :  { %1076 = vmatpush1.bf16.msra.mxu0 %v1906_v56  ;;  %1740 = vmatpush3.bf16.msra.mxu1 %v1946_v15  ;;  %v1965_v56 = vld [vmem:[#allocation7 + $0x278] ss:$12 sps:$4 sm:$0xff]   ;;  %v1979_v15 = vld [vmem:[#allocation7 + $0x1fc] ss:$12 sps:$4 sm:$0xff]  }
  0x87   :  { %1077 = vmatprep.subr.bf16.mxu0 %v1911_v58  ;;  %1741 = vmatprep.subr.bf16.mxu1 %v1950_v17  ;;  %v414_v58 = vrot.slane %v409_v52, %v2267_v24  ;;  %v2017_v52 = vld [vmem:[#allocation8] sm:$0xff]  }
  0x8a   :  { %1078 = vmatpush1.bf16.msra.mxu0 %v1909_v60  ;;  %1742 = vmatpush3.bf16.msra.mxu1 %v1951_v19  ;;  %v373_v60 = vsub.s32 2, %v2264_v23  ;;  %v1981_v19 = vld [vmem:[#allocation7 + $0x200] ss:$12 sps:$4 sm:$0xff]   ;;  %v2039_v23 = vld [vmem:[#allocation8 + $0xb8] sm:$0xff]  }
  0x8b   :  { %1079 = vmatprep.subr.bf16.mxu0 %v1914_v62  ;;  %1749 = vmatprep.subr.bf16.mxu1 %v1955_v21  ;;  %v1985_v21 = vld [vmem:[#allocation7 + $0x2d8] ss:$12 sps:$4 sm:$0xff]  }
  0x8e   :  { %1080 = vmatpush1.bf16.msra.mxu0 %v1912_v1  ;;  %v1966_v1 = vld [vmem:[#allocation7 + $0x1b8] ss:$12 sps:$4 sm:$0xff]  }
  0x8f   :  { %1081 = vmatprep.subr.bf16.mxu0 %v1919_v2 }
  0x92   :  { %1082 = vmatpush1.bf16.msra.mxu0 %v1917_v3  ;;  %v1969_v3 = vld [vmem:[#allocation7 + $0x1cc] ss:$12 sps:$4 sm:$0xff]  }
  0x93   :  { %1083 = vmatprep.subr.bf16.mxu0 %v1924_v4  ;;  %v1970_v4 = vld [vmem:[#allocation7 + $0x290] ss:$12 sps:$4 sm:$0xff]  }
  0x96   :  { %1084 = vmatpush1.bf16.msra.mxu0 %v1922_v5 }
  0x97   :  { %1085 = vmatprep.subr.bf16.mxu0 %v1929_v6  ;;  %v374_v6 = vrot.slane %v361_v25, %v373_v60 }
  0x9a   :  { %1086 = vmatpush1.bf16.msra.mxu0 %v1927_v7 }
  0x9b   :  { %1087 = vmatprep.subr.bf16.mxu0 %v1934_v8  ;;  %v1967_v8 = vld [vmem:[#allocation7 + $0x1c8] ss:$12 sps:$4 sm:$0xff]  }
  0x9e   :  { %1088 = vmatpush1.bf16.msra.mxu0 %v1932_v9  ;;  %v1971_v9 = vld [vmem:[#allocation7 + $0x1d0] ss:$12 sps:$4 sm:$0xff]  }
  0x9f   :  { %1089 = vmatprep.subr.bf16.mxu0 %v1939_v10  ;;  %v1974_v10 = vld [vmem:[#allocation7 + $0x1e4] ss:$12 sps:$4 sm:$0xff]  }
  0xa2   :  { %1090 = vmatpush1.bf16.msra.mxu0 %v1937_v11  ;;  %v1975_v11 = vld [vmem:[#allocation7 + $0x2a8] ss:$12 sps:$4 sm:$0xff]  }
  0xa3   :  { %1091 = vmatprep.subr.bf16.mxu0 %v1944_v12  ;;  %v385_v12 = vpack.c.bf16 %v374_v6, %v374_v6 }
  0xa5   :  { %v402_v17 = vpack.i.b16 %v385_v12, %v385_v12 }
  0xa6   :  { %1092 = vmatpush1.bf16.msra.mxu0 %v1942_v14  ;;  %v1976_v14 = vld [vmem:[#allocation7 + $0x1e8] ss:$12 sps:$4 sm:$0xff]  }
  0xa7   :  { %1093 = vmatprep.subr.bf16.mxu0 %v1949_v16  ;;  %v1980_v16 = vld [vmem:[#allocation7 + $0x2c0] ss:$12 sps:$4 sm:$0xff]   ;;  %v407_v25 = vrot.slane %v402_v17, %v2267_v24  ;;  %v1228_v17 = vld [vmem:[%s2330_s4] sm:$0x7] }
  0xaa   :  { %1094 = vmatpush1.bf16.msra.mxu0 %v1947_v18  ;;  %v1977_v18 = vld [vmem:[#allocation7 + $0x1f8] ss:$12 sps:$4 sm:$0xff]  }
  0xab   :  { %1104 = vmatprep.subr.bf16.mxu0 %v1954_v20  ;;  %v1984_v20 = vld [vmem:[#allocation7 + $0x214] ss:$12 sps:$4 sm:$0xff]  }
 0x140   :  { %v309_v36 = vpop.f32.mrb[0].mxu0  ;;  %v350_v57 = vpop.f32.mrb[0].mxu1 }
 0x141   :  { %v357_v38 = vpack.c.bf16 %v309_v36, %v309_v36  ;;  %v311_v39 = vpop.f32.mrb[1].mxu0  ;;  %v352_v59 = vpop.f32.mrb[1].mxu1  ;;  %v359_v22 = vpack.c.bf16 %v350_v57, %v350_v57  ;;  %v1992_v36 = vld [vmem:[#allocation7 + $0x240] ss:$12 sps:$4 sm:$0xff]   ;;  %v2022_v57 = vld [vmem:[#allocation8 + $0x58] sm:$0xff]  }
 0x142   :  { %v358_v40 = vpack.c.bf16 %v311_v39, %v311_v39  ;;  %v313_v41 = vpop.f32.mrb[2].mxu0  ;;  %v360_v61 = vpack.c.bf16 %v352_v59, %v352_v59  ;;  %v354_v62 = vpop.f32.mrb[2].mxu1  ;;  %v2000_v39 = vld [vmem:[#allocation7 + $0x274] ss:$12 sps:$4 sm:$0xff]  }
 0x143   :  { %v415_v42 = vadd.bf16 %v393_v34, %v357_v38  ;;  %v314_v43 = vpop.f32.mrb[3].mxu0  ;;  %v355_v2 = vpop.f32.mrb[3].mxu1  ;;  %v417_v31 = vadd.bf16 %v407_v25, %v359_v22  ;;  %v1994_v34 = vld [vmem:[#allocation7 + $0x244] ss:$12 sps:$4 sm:$0xff]   ;;  %v2003_v41 = vld [vmem:[#allocation7 + $0x28c] ss:$12 sps:$4 sm:$0xff]  }
 0x144   :  { %v416_v45 = vadd.bf16 %v400_v37, %v358_v40  ;;  %v418_v5 = vadd.bf16 %v414_v58, %v360_v61  ;;  %v1997_v37 = vld [vmem:[#allocation7 + $0x25c] ss:$12 sps:$4 sm:$0xff]   ;;  %v1995_v38 = vld [vmem:[#allocation7 + $0x258] ss:$12 sps:$4 sm:$0xff]   ;;  %v2029_v2 = vld [vmem:[#allocation8 + $0x30] sm:$0xff]  }
 0x145   :  { %v419_v49 = vmax.bf16 %v2170_v0, %v415_v42  ;;  %v421_v35 = vmax.bf16 %v2170_v0, %v417_v31  ;;  %v1998_v40 = vld [vmem:[#allocation7 + $0x270] ss:$12 sps:$4 sm:$0xff]   ;;  %v2001_v42 = vld [vmem:[#allocation7 + $0x288] ss:$12 sps:$4 sm:$0xff]   ;;  %v2024_v59 = vld [vmem:[#allocation8 + $0x60] sm:$0xff]  }
 0x146   :  { %v420_v46 = vmax.bf16 %v2170_v0, %v416_v45  ;;  %v422_v7 = vmax.bf16 %v2170_v0, %v418_v5  ;;  %v2006_v43 = vld [vmem:[#allocation7 + $0x2a4] ss:$12 sps:$4 sm:$0xff]   ;;  %v2009_v45 = vld [vmem:[#allocation7 + $0x2bc] ss:$12 sps:$4 sm:$0xff]   ;;  %v2171_v5 = vmov 0.0  }
 0x147   :  { %v2023_v58 = vld [vmem:[#allocation8 + $0x18] sm:$0xff]   ;;  %v2025_v61 = vld [vmem:[#allocation8 + $0x20] sm:$0xff]   ;;  %v2026_v62 = vld [vmem:[#allocation8 + $0x68] sm:$0xff]  }
 0x148   :  { %1095 = vmatprep.mubr.bf16.mxu0 %v420_v46  ;;  %1177 = vmatprep.mubr.bf16.mxu1 %v420_v46  ;;  %v2007_v46 = vld [vmem:[#allocation7 + $0x2b8] ss:$12 sps:$4 sm:$0xff]  }
 0x149   :  { %1096 = vmatmul.mubr.bf16.vlgmr.msra.gmra.mrb[4].mxu0 %v419_v49  ;;  %1178 = vmatmul.mubr.bf16.vlgmr.msra.gmra.mrb[4].mxu1 %v419_v49  ;;  %v2015_v49 = vld [vmem:[#allocation7 + $0x2ec] ss:$12 sps:$4 sm:$0xff]  }
 0x14a   :  { %1105 = vmatpush1.bf16.msra.mxu0 %v1952_v47  ;;  %1750 = vmatpush3.bf16.msra.mxu1 %v1956_v48  ;;  %v2012_v47 = vld [vmem:[#allocation7 + $0x2d4] ss:$12 sps:$4 sm:$0xff]   ;;  %v2010_v48 = vld [vmem:[#allocation7 + $0x2d0] ss:$12 sps:$4 sm:$0xff]  }
 0x14b   :  { %1106 = vmatprep.subr.bf16.mxu0 %v1959_v50  ;;  %1751 = vmatprep.subr.bf16.mxu1 %v1960_v51  ;;  %v2013_v50 = vld [vmem:[#allocation7 + $0x2e8] ss:$12 sps:$4 sm:$0xff]   ;;  %v2016_v51 = vld [vmem:[#allocation8 + $0x40] sm:$0xff]  }
 0x14c   :  { %1217 = vmatprep.mubr.bf16.mxu1 %v422_v7  ;;  %1136 = vmatprep.mubr.bf16.mxu0 %v422_v7 }
 0x14e   :  { %1107 = vmatpush1.bf16.msra.mxu0 %v1957_v53  ;;  %1752 = vmatpush3.bf16.msra.mxu1 %v1961_v54  ;;  %v2018_v53 = vld [vmem:[#allocation8 + $0x48] sm:$0xff]  }
 0x14f   :  { %1108 = vmatprep.subr.bf16.mxu0 %v1964_v55  ;;  %1753 = vmatprep.subr.bf16.mxu1 %v1965_v56  ;;  %v2019_v54 = vld [vmem:[#allocation8 + $0x8] sm:$0xff]   ;;  %v2020_v55 = vld [vmem:[#allocation8 + $0x50] sm:$0xff]  }
 0x150   :  { %v2021_v56 = vld [vmem:[#allocation8 + $0x10] sm:$0xff]  }
 0x152   :  { %1109 = vmatpush1.bf16.msra.mxu0 %v1962_v63  ;;  %1754 = vmatpush3.bf16.msra.mxu1 %v1966_v1  ;;  %v2027_v63 = vld [vmem:[#allocation8 + $0x28] sm:$0xff]   ;;  %v2028_v1 = vld [vmem:[#allocation8 + $0x70] sm:$0xff]  }
 0x153   :  { %1110 = vmatprep.subr.bf16.mxu0 %v1969_v3  ;;  %1755 = vmatprep.subr.bf16.mxu1 %v1970_v4  ;;  %v2030_v3 = vld [vmem:[#allocation8 + $0x78] sm:$0xff]  }
 0x154   :  { %v2031_v4 = vld [vmem:[#allocation8 + $0x38] sm:$0xff]  }
 0x156   :  { %1111 = vmatpush1.bf16.msra.mxu0 %v1967_v8  ;;  %1756 = vmatpush3.bf16.msra.mxu1 %v1971_v9 }
 0x157   :  { %1112 = vmatprep.subr.bf16.mxu0 %v1974_v10  ;;  %1757 = vmatprep.subr.bf16.mxu1 %v1975_v11 }
 0x15a   :  { %1113 = vmatpush1.bf16.msra.mxu0 %v1972_v13  ;;  %1758 = vmatpush3.bf16.msra.mxu1 %v1976_v14 }
 0x15b   :  { %1114 = vmatprep.subr.bf16.mxu0 %v1979_v15  ;;  %1759 = vmatprep.subr.bf16.mxu1 %v1980_v16 }
 0x15e   :  { %1115 = vmatpush1.bf16.msra.mxu0 %v1977_v18  ;;  %1760 = vmatpush3.bf16.msra.mxu1 %v1981_v19  ;;  %v1233_v18 = vrot.slane %v1228_v17, %v2267_v24  ;;  %v1237_v19 = vrot.slane %v1228_v17, %v369_v26 }
 0x15f   :  { %1116 = vmatprep.subr.bf16.mxu0 %v1984_v20  ;;  %1761 = vmatprep.subr.bf16.mxu1 %v1985_v21 }
 0x160   :  { %v1245_v20 = vpack.c.bf16 %v1233_v18, %v1233_v18  ;;  %v1246_v21 = vpack.c.bf16 %v1237_v19, %v1237_v19 }
 0x162   :  { %1117 = vmatpush1.bf16.msra.mxu0 %v1982_v27  ;;  %1762 = vmatpush3.bf16.msra.mxu1 %v1986_v28  ;;  %v1249_v22 = vpack.i.b16 %v1245_v20, %v1245_v20  ;;  %v1256_v25 = vpack.i.b16 %v1246_v21, %v1246_v21 }
 0x163   :  { %1118 = vmatprep.subr.bf16.mxu0 %v1989_v29  ;;  %1763 = vmatprep.subr.bf16.mxu1 %v1990_v30 }
 0x164   :  { %v1254_v27 = vrot.slane %v1249_v22, %v2267_v24  ;;  %v1261_v29 = vrot.slane %v1256_v25, %v2267_v24 }
 0x166   :  { %1119 = vmatpush1.bf16.msra.mxu0 %v1987_v32  ;;  %1764 = vmatpush3.bf16.msra.mxu1 %v1991_v33 }
 0x167   :  { %1120 = vmatprep.subr.bf16.mxu0 %v1994_v34  ;;  %1771 = vmatprep.subr.bf16.mxu1 %v2016_v51 }
 0x169   :  { %1218 = vmatmul.mubr.bf16.vlgmr.msra.gmra.mrb[8].mxu1 %v421_v35 }
 0x16a   :  { %1121 = vmatpush1.bf16.msra.mxu0 %v1992_v36  ;;  %1772 = vmatpush3.bf16.msra.mxu1 %v2017_v52 }
 0x16b   :  { %1122 = vmatprep.subr.bf16.mxu0 %v1997_v37  ;;  %1773 = vmatprep.subr.bf16.mxu1 %v2018_v53 }
 0x16e   :  { %1123 = vmatpush1.bf16.msra.mxu0 %v1995_v38  ;;  %1774 = vmatpush3.bf16.msra.mxu1 %v2019_v54  ;;  %v2032_v38 = vld [vmem:[#allocation8 + $0x80] sm:$0xff]  }
 0x16f   :  { %1124 = vmatprep.subr.bf16.mxu0 %v2000_v39  ;;  %1775 = vmatprep.subr.bf16.mxu1 %v2020_v55  ;;  %v2033_v39 = vld [vmem:[#allocation8 + $0x88] sm:$0xff]  }
 0x172   :  { %1125 = vmatpush1.bf16.msra.mxu0 %v1998_v40  ;;  %1776 = vmatpush3.bf16.msra.mxu1 %v2021_v56  ;;  %v2034_v40 = vld [vmem:[#allocation8 + $0x90] sm:$0xff]  }
 0x173   :  { %1126 = vmatprep.subr.bf16.mxu0 %v2003_v41  ;;  %1777 = vmatprep.subr.bf16.mxu1 %v2022_v57  ;;  %v2035_v41 = vld [vmem:[#allocation8 + $0x98] sm:$0xff]  }
 0x176   :  { %1127 = vmatpush1.bf16.msra.mxu0 %v2001_v42  ;;  %1778 = vmatpush3.bf16.msra.mxu1 %v2023_v58  ;;  %v1241_v42 = vrot.slane %v1228_v17, %v373_v60 }
 0x177   :  { %1128 = vmatprep.subr.bf16.mxu0 %v2006_v43  ;;  %1779 = vmatprep.subr.bf16.mxu1 %v2024_v59  ;;  %v2036_v43 = vld [vmem:[#allocation8 + $0xa0] sm:$0xff]  }
 0x17a   :  { %1129 = vmatpush1.bf16.msra.mxu0 %v2004_v44  ;;  %1780 = vmatpush3.bf16.msra.mxu1 %v2025_v61  ;;  %v1247_v44 = vpack.c.bf16 %v1241_v42, %v1241_v42 }
 0x17b   :  { %1130 = vmatprep.subr.bf16.mxu0 %v2009_v45  ;;  %1781 = vmatprep.subr.bf16.mxu1 %v2026_v62  ;;  %v2037_v45 = vld [vmem:[#allocation8 + $0xa8] sm:$0xff]  }
 0x17e   :  { %1131 = vmatpush1.bf16.msra.mxu0 %v2007_v46  ;;  %1782 = vmatpush3.bf16.msra.mxu1 %v2027_v63  ;;  %v1263_v46 = vpack.i.b16 %v1247_v44, %v1247_v44 }
 0x17f   :  { %1132 = vmatprep.subr.bf16.mxu0 %v2012_v47  ;;  %1783 = vmatprep.subr.bf16.mxu1 %v2028_v1  ;;  %v2038_v47 = vld [vmem:[#allocation8 + $0xb0] sm:$0xff]  }
 0x182   :  { %1133 = vmatpush1.bf16.msra.mxu0 %v2010_v48  ;;  %1784 = vmatpush3.bf16.msra.mxu1 %v2029_v2 }
 0x183   :  { %1134 = vmatprep.subr.bf16.mxu0 %v2015_v49  ;;  %1785 = vmatprep.subr.bf16.mxu1 %v2030_v3  ;;  %v1268_v49 = vrot.slane %v1263_v46, %v2267_v24  ;;  %v1702_v24 = vld [vmem:[%s2332_s6] ss:$0 sm:$0xff] }
 0x186   :  { %1135 = vmatpush1.bf16.msra.mxu0 %v2013_v50  ;;  %1786 = vmatpush3.bf16.msra.mxu1 %v2031_v4 }
 0x187   :  { %1802 = vmatprep.subr.bf16.mxu1 %v2171_v5 }
 0x189   :  { %1137 = vmatmul.mubr.bf16.vlgmr.msra.gmra.mrb[4].mxu0 %v421_v35 }
 0x21c   :  { %v1743_v6 = vpop.f32.mrb[4].mxu1 }
 0x21d   :  { %v1744_v7 = vpop.f32.mrb[5].mxu1 }
 0x21e   :  { %v1745_v8 = vadd.f32 %v1744_v7, %v1743_v6  ;;  %v1746_v9 = vpop.f32.mrb[6].mxu1 }
 0x21f   :  { %v1747_v10 = vpop.f32.mrb[7].mxu1 }
 0x23c   :  { %v1765_v11 = vpop.f32.mrb[8].mxu1 }
 0x23d   :  { %v1766_v12 = vpop.f32.mrb[9].mxu1 }
 0x23e   :  { %v1767_v13 = vadd.f32 %v1766_v12, %v1765_v11  ;;  %v1768_v14 = vpop.f32.mrb[10].mxu1 }
 0x23f   :  { %v1769_v15 = vpop.f32.mrb[11].mxu1 }
 0x240   :  { %v1220_v16 = vadd.f32 %v1767_v13, %v1745_v8 }
 0x242   :  { %v1227_v48 = vpack.c.bf16 %v1220_v16, %v1220_v16 }
 0x244   :  { %v1271_v60 = vadd.bf16 %v1268_v49, %v1227_v48 }
 0x246   :  { %v1274_v50 = vmax.bf16 %v2170_v0, %v1271_v60 }
 0x25c   :  { %v1138_v28 = vpop.f32.mrb[4].mxu0 }
 0x25d   :  { %v1225_v30 = vpack.c.bf16 %v1138_v28, %v1138_v28  ;;  %v1140_v31 = vpop.f32.mrb[5].mxu0 }
 0x25e   :  { %v1226_v32 = vpack.c.bf16 %v1140_v31, %v1140_v31  ;;  %v1142_v33 = vpop.f32.mrb[6].mxu0 }
 0x25f   :  { %v1269_v34 = vadd.bf16 %v1254_v27, %v1225_v30  ;;  %v1143_v35 = vpop.f32.mrb[7].mxu0 }
 0x260   :  { %v1270_v36 = vadd.bf16 %v1261_v29, %v1226_v32 }
 0x261   :  { %v1272_v26 = vmax.bf16 %v2170_v0, %v1269_v34 }
 0x262   :  { %v1273_v37 = vmax.bf16 %v2170_v0, %v1270_v36 }
 0x264   :  { %1506 = vmatprep.mubr.bf16.mxu1 %v1273_v37 }
 0x265   :  { %1507 = vmatmul.mubr.bf16.vlgmr.msra.gmra.mrb[12].mxu1 %v1272_v26 }
 0x266   :  { %1803 = vmatpush3.bf16.msra.mxu1 %v2032_v38  ;;  %1818 = vmatprep.mubr.msk.bf16.mxu1 %vm2172_vm0, %v2171_v5 }
 0x267   :  { %1804 = vmatprep.subr.bf16.mxu1 %v2171_v5 }
 0x26a   :  { %1805 = vmatpush3.bf16.msra.mxu1 %v2033_v39 }
 0x26b   :  { %1806 = vmatprep.subr.bf16.mxu1 %v2171_v5 }
 0x26e   :  { %1807 = vmatpush3.bf16.msra.mxu1 %v2034_v40 }
 0x26f   :  { %1808 = vmatprep.subr.bf16.mxu1 %v2171_v5 }
 0x272   :  { %1809 = vmatpush3.bf16.msra.mxu1 %v2035_v41 }
 0x273   :  { %1810 = vmatprep.subr.bf16.mxu1 %v2171_v5 }
 0x276   :  { %1811 = vmatpush3.bf16.msra.mxu1 %v2036_v43 }
 0x277   :  { %1812 = vmatprep.subr.bf16.mxu1 %v2171_v5 }
 0x27a   :  { %1813 = vmatpush3.bf16.msra.mxu1 %v2037_v45 }
 0x27b   :  { %1814 = vmatprep.subr.bf16.mxu1 %v2171_v5 }
 0x27e   :  { %1815 = vmatpush3.bf16.msra.mxu1 %v2038_v47 }
 0x27f   :  { %1816 = vmatprep.subr.bf16.mxu1 %v2171_v5 }
 0x282   :  { %1817 = vmatpush3.bf16.msra.mxu1 %v2039_v23 }
 0x285   :  { %1819 = vmatmul.mubr.bf16.vlgmr.msra.gmra.mrb[16].mxu1 %v1274_v50 }
 0x338   :  { %v1787_v51 = vpop.f32.mrb[12].mxu1 }
 0x339   :  { %v1788_v52 = vpop.f32.mrb[13].mxu1 }
 0x33a   :  { %v1789_v53 = vadd.f32 %v1788_v52, %v1787_v51  ;;  %v1790_v54 = vpop.f32.mrb[14].mxu1 }
 0x33b   :  { %v1791_v55 = vpop.f32.mrb[15].mxu1 }
 0x33c   :  { %v1509_v56 = vadd.f32 %v1789_v53, %v1702_v24 }
 0x358   :  { %v1548_v57 = vpop.f32.mrb[16].mxu1 }
 0x359   :  { %v1549_v58 = vadd.f32 %v1548_v57, %v1509_v56  ;;  %v1820_v59 = vpop.f32.mrb[17].mxu1 }
 0x35a   :  { %v1551_v61 = vpop.f32.mrb[18].mxu1 }
 0x35b   :  { %2040 = vtanh.f32 %v1549_v58  ;;  %v1821_v62 = vpop.f32.mrb[19].mxu1 }
 0x365   :  { %v2041_v0 = vpop.eup %2040 }
 0x366   :  { %v1555_v63 = vpack.c.bf16 %v2041_v0, %v2041_v0 }
 0x368   :  { %1556 = vst [vmem:[#allocation10] sm:$0xf] %v1555_v63 }
 0x369   :  { %2141 = shalt.err (!%p2138_p8)
}
 0x36a   :  { %s2142_s12 = scalar_lea.hbm %s2333_s7, 64 }
 0x36b   :  { %p2143_p9 = scmp.ne.s32.totalorder %s2333_s7, %s2142_s12  ;;  %p2146_p10 = scmp.lt.u32.totalorder %s2142_s12, %s2333_s7 }
 0x36d   :  { %p2148_p11 = pnand %p2146_p10, %p2143_p9 }
 0x36f   :  { %2151 = shalt.err (!%p2148_p11)
}
 0x370   :  { %1566 = dma.vmem_to_hbm [thread:$0]  %s1564_s9, 64, %s2333_s7, [#allocation4]  }
 0x371   :  { %2158 = dma.done.wait [#allocation4], 64  }
 0x372   :  { %2159 = vsyncadd [#allocation4], 4294967232 }
 0x373   :  { %1570 = vsyncpa [#allocation3], 1 }
 0x374   :  { %1571 = vsyncpa [#allocation6], 1 }
 0x375   :  { %1572 = vsyncpa [#allocation9], 1 }
 0x376   :  { %1573 = vsyncpa [#allocation4], 1 }

</bundles_post_ra>
